<compile_context>
chip_gen: v7x
topology: tpu7x:2x2x1
jax: 0.10.0
libtpu: 0.0.40
codegen_flags: <defaults>
</compile_context>

<pallas_src>
import functools

import jax
import jax.numpy as jnp
from jax import lax
from jax.experimental import pallas as pl
from jax.experimental.pallas import tpu as pltpu


# --- "FeatureConfig" stand-in (deterministic, in-script) ---------------------
NEG_COEF = 1.0          # config.neg_coef
NEG_LOSS_WEIGHT = 1.0   # negative_loss_weight

LANE = 128
SUBLANE = 8


def _round_up(x, m):
    return (x + m - 1) // m * m


def _cdiv(a, b):
    return -(-a // b)


def _contrastive_kernel(idx_m_ref, idx_p_ref, fm_ref, fp_ref, out_ref, *,
                        blk, n_blocks, n_rows_m, n_rows_p, chunks,
                        n_pos, n_neg):
    """grid = (2 groups [pos, neg], n_blocks pair-blocks).

    idx_m_ref, idx_p_ref : VMEM int32 (blk, 1) — model / pointcloud row ids
    fm_ref, fp_ref       : VMEM feature tables (rows padded to 8, dims to 128)
    out_ref              : SMEM f32 (2*n_blocks,) — per-block partial sums
    """
    g = pl.program_id(0)          # 0 -> positive pairs, 1 -> negative pairs
    b = pl.program_id(1)          # pair-block index within the group

    feat_dtype = fm_ref.dtype
    idx_m = idx_m_ref[...]        # (blk, 1) int32
    idx_p = idx_p_ref[...]        # (blk, 1) int32

    # One-hot gather matrices (exact 0/1 weights), built on the VPU.
    onehot_m = (lax.broadcasted_iota(jnp.int32, (blk, n_rows_m), 1)
                == idx_m).astype(feat_dtype)
    onehot_p = (lax.broadcasted_iota(jnp.int32, (blk, n_rows_p), 1)
                == idx_p).astype(feat_dtype)

    # Gather + subtract + squared-distance, chunked over <=512-lane feature
    # slices so the (blk, chunk) f32 temporaries stay bounded.
    ssq = jnp.zeros((blk, 1), jnp.float32)
    for lo, hi in chunks:                         # static, few iterations
        a = jnp.dot(onehot_p, fp_ref[:, lo:hi],
                    preferred_element_type=jnp.float32,
                    precision=jax.lax.Precision.HIGHEST)
        c = jnp.dot(onehot_m, fm_ref[:, lo:hi],
                    preferred_element_type=jnp.float32,
                    precision=jax.lax.Precision.HIGHEST)
        diff = a - c
        ssq = ssq + jnp.sum(diff * diff, axis=-1, keepdims=True)

    dist = jnp.sqrt(ssq)                          # (blk, 1) vector sqrt (EUP)

    # Mask padded pairs of the (possibly partial) last block BEFORE summing.
    n_valid = jnp.where(g == 0, jnp.int32(n_pos), jnp.int32(n_neg))
    pair = lax.broadcasted_iota(jnp.int32, (blk, 1), 0) + b * blk
    dist = jnp.where(pair < n_valid, dist, jnp.float32(0.0))

    # One scalar per block; means/combine happen in the wrapper.
    out_ref[g * n_blocks + b] = jnp.sum(dist)


def contrastive_loss(features_model, features_pointcloud,
                     positive_indices, negative_indices,
                     *, block=256, d_chunk=512,
                     neg_coef=NEG_COEF, weight=NEG_LOSS_WEIGHT):
    """Pallas wrapper. Returns a scalar float32 loss."""
    fm = jnp.asarray(features_model)
    fp = jnp.asarray(features_pointcloud)
    pos_idx = jnp.asarray(positive_indices).astype(jnp.int32)
    neg_idx = jnp.asarray(negative_indices).astype(jnp.int32)

    n_pos = int(pos_idx.shape[0])
    n_neg = int(neg_idx.shape[0])
    assert n_pos > 0 and n_neg > 0, "empty index sets give an undefined mean"
    d = int(fm.shape[1])
    assert int(fp.shape[1]) == d

    rows_m, rows_p = int(fm.shape[0]), int(fp.shape[0])
    rows_m_pad = _round_up(rows_m, SUBLANE)
    rows_p_pad = _round_up(rows_p, SUBLANE)
    d_pad = _round_up(d, LANE)

    # Pad only when needed (avoid an extra full HBM copy of aligned tables).
    def _maybe_pad(x, r_pad, c_pad):
        pr, pc = r_pad - x.shape[0], c_pad - x.shape[1]
        if pr == 0 and pc == 0:
            return x
        return jnp.pad(x, ((0, pr), (0, pc)))   # zeros don't change L2 distance

    fm_p = _maybe_pad(fm, rows_m_pad, d_pad)
    fp_p = _maybe_pad(fp, rows_p_pad, d_pad)

    # Pair-block size: multiple of 8 sublanes, capped at `block` (256 default
    # fills the 256-row MXU side on v6e/v7x; fine on v5e too).
    blk_sz = _round_up(min(block, max(n_pos, n_neg)), SUBLANE)
    n_blocks = max(_cdiv(n_pos, blk_sz), _cdiv(n_neg, blk_sz))
    total = n_blocks * blk_sz

    def pad_col(idx, col):
        v = idx[:, col]
        return jnp.pad(v, (0, total - v.shape[0]))   # pad idx 0; masked in-kernel

    # Group-major flat index columns, shaped (2*total, 1) for lane-thin VMEM tiles.
    idx_model = jnp.concatenate([pad_col(pos_idx, 0), pad_col(neg_idx, 0)])[:, None]
    idx_pc = jnp.concatenate([pad_col(pos_idx, 1), pad_col(neg_idx, 1)])[:, None]

    # Static feature-dim chunks (each width a multiple of 128).
    chunks = tuple((lo, min(d_pad, lo + d_chunk)) for lo in range(0, d_pad, d_chunk))

    # VMEM budget: resident tables + per-block one-hots / f32 temporaries /
    # double-buffered index tiles, clamped to ~75% of this chip's physical VMEM.
    itm = fm_p.dtype.itemsize
    table_bytes = fm_p.size * itm + fp_p.size * itm
    per_block_bytes = (2 * blk_sz * max(rows_m_pad, rows_p_pad) * itm   # one-hots
                       + 4 * blk_sz * min(d_pad, d_chunk) * 4           # a/c/diff/ssq
                       + 2 * 2 * blk_sz * LANE * 4)                     # idx tiles (x2 buf)
    vmem_needed = table_bytes + per_block_bytes
    try:
        vmem_cap = int(pltpu.get_tpu_info().vmem_capacity_bytes)
    except Exception:
        vmem_cap = 64 * 2**20
    vmem_limit = int(min(vmem_cap * 3 // 4, max(32 * 2**20, 2 * vmem_needed)))
    # TODO(synk): when vmem_needed approaches vmem_limit, switch the tables to
    #             HBM (memory_space=pl.ANY) + DMA row-gather with prefetched indices.

    kernel = functools.partial(
        _contrastive_kernel,
        blk=blk_sz, n_blocks=n_blocks,
        n_rows_m=rows_m_pad, n_rows_p=rows_p_pad,
        chunks=chunks, n_pos=n_pos, n_neg=n_neg,
    )

    idx_spec = pl.BlockSpec((blk_sz, 1), lambda g, b: (g * n_blocks + b, 0))

    partials = pl.pallas_call(
        kernel,
        out_shape=jax.ShapeDtypeStruct((2 * n_blocks,), jnp.float32),
        grid_spec=pltpu.PrefetchScalarGridSpec(
            num_scalar_prefetch=0,
            grid=(2, n_blocks),
            in_specs=[
                idx_spec,                                               # model row ids
                idx_spec,                                               # pointcloud row ids
                pl.BlockSpec(memory_space=pltpu.MemorySpace.VMEM),      # features_model
                pl.BlockSpec(memory_space=pltpu.MemorySpace.VMEM),      # features_pointcloud
            ],
            out_specs=pl.BlockSpec(memory_space=pltpu.MemorySpace.SMEM),  # 1-D partial sums
        ),
        compiler_params=pltpu.CompilerParams(
            dimension_semantics=("arbitrary", "arbitrary"),
            vmem_limit_bytes=vmem_limit,
        ),
    )(idx_model, idx_pc, fm_p, fp_p)

    pos_mean = jnp.sum(partials[:n_blocks]) / jnp.float32(n_pos)
    neg_mean = jnp.sum(partials[n_blocks:]) / jnp.float32(n_neg)
    # relu(dist) == dist (dist >= 0), so the relu is a no-op and is dropped.
    return pos_mean + jnp.float32(weight) * (jnp.float32(neg_coef) - neg_mean)


def _reference_loss(features_model, features_pointcloud,
                    positive_indices, negative_indices):
    """Pure-JAX reference mirroring the PyTorch forward."""
    def dist(f1, f2):
        return jnp.sqrt(jnp.sum((f1 - f2) ** 2, axis=-1))

    pos = dist(features_pointcloud[positive_indices[:, 1]],
               features_model[positive_indices[:, 0]]).mean()
    neg = NEG_COEF - jax.nn.relu(
        dist(features_pointcloud[negative_indices[:, 1]],
             features_model[negative_indices[:, 0]])).mean()
    return pos + NEG_LOSS_WEIGHT * neg


if __name__ == "__main__":
    key = jax.random.PRNGKey(0)
    k1, k2, k3, k4 = jax.random.split(key, 4)

    n_model, n_pc, feat_dim = 16, 16, 32
    n_pos, n_neg = 10, 6   # uneven counts exercise the padded-block mask path

    features_model = jax.random.normal(k1, (n_model, feat_dim), dtype=jnp.float32)
    features_pointcloud = jax.random.normal(k2, (n_pc, feat_dim), dtype=jnp.float32)
    positive_indices = jnp.stack(
        [jax.random.randint(k3, (n_pos,), 0, n_model),
         jax.random.randint(jax.random.fold_in(k3, 1), (n_pos,), 0, n_pc)], axis=1
    ).astype(jnp.int32)
    negative_indices = jnp.stack(
        [jax.random.randint(k4, (n_neg,), 0, n_model),
         jax.random.randint(jax.random.fold_in(k4, 1), (n_neg,), 0, n_pc)], axis=1
    ).astype(jnp.int32)

    loss = contrastive_loss(features_model, features_pointcloud,
                            positive_indices, negative_indices)
    loss = jax.block_until_ready(loss)

    ref = _reference_loss(features_model, features_pointcloud,
                          positive_indices, negative_indices)
    assert jnp.allclose(loss, ref, atol=1e-4, rtol=1e-5), (loss, ref)

    print("KERNEL_OK")
</pallas_src>

<mosaic_0001>
module attributes {stable_mosaic.version = 11 : i64} {
  func.func @_contrastive_kernel(%arg0: i32, %arg1: i32, %arg2: memref<16x1xi32, #tpu.memory_space<vmem>>, %arg3: memref<16x1xi32, #tpu.memory_space<vmem>>, %arg4: memref<16x128xf32, #tpu.memory_space<vmem>>, %arg5: memref<16x128xf32, #tpu.memory_space<vmem>>, %arg6: memref<2xf32, #tpu.memory_space<smem>>) attributes {dimension_semantics = [#tpu.dimension_semantics<arbitrary>, #tpu.dimension_semantics<arbitrary>], iteration_bounds = array<i64: 2, 1>, scalar_prefetch = 0 : i64, scratch_operands = 0 : i64, tpu.core_type = #tpu.core_type<tc>, window_params = [{transform_indices = @transform_0, window_bounds = array<i64: 16, 1>}, {transform_indices = @transform_1, window_bounds = array<i64: 16, 1>}, {pipeline_mode = #tpu.pipeline_mode<synchronous>, transform_indices = @transform_2, window_bounds = array<i64: 16, 128>}, {pipeline_mode = #tpu.pipeline_mode<synchronous>, transform_indices = @transform_3, window_bounds = array<i64: 16, 128>}, {transform_indices = @transform_4, window_bounds = array<i64: 2>}]} {
    %c0 = arith.constant 0 : index
    %c0_0 = arith.constant 0 : index
    %0 = vector.load %arg2[%c0, %c0_0] : memref<16x1xi32, #tpu.memory_space<vmem>>, vector<16x1xi32>
    %c0_1 = arith.constant 0 : index
    %c0_2 = arith.constant 0 : index
    %1 = vector.load %arg3[%c0_1, %c0_2] : memref<16x1xi32, #tpu.memory_space<vmem>>, vector<16x1xi32>
    %2 = tpu.iota {dimensions = array<i32: 1>} : vector<16x16xi32>
    %3 = vector.broadcast %0 : vector<16x1xi32> to vector<16x16xi32>
    %4 = arith.cmpi eq, %2, %3 : vector<16x16xi32>
    %5 = arith.extui %4 : vector<16x16xi1> to vector<16x16xi32>
    %6 = arith.sitofp %5 : vector<16x16xi32> to vector<16x16xf32>
    %7 = tpu.iota {dimensions = array<i32: 1>} : vector<16x16xi32>
    %8 = vector.broadcast %1 : vector<16x1xi32> to vector<16x16xi32>
    %9 = arith.cmpi eq, %7, %8 : vector<16x16xi32>
    %10 = arith.extui %9 : vector<16x16xi1> to vector<16x16xi32>
    %11 = arith.sitofp %10 : vector<16x16xi32> to vector<16x16xf32>
    %cst = arith.constant 0.000000e+00 : f32
    %12 = vector.broadcast %cst : f32 to vector<16x1xf32>
    %c0_3 = arith.constant 0 : index
    %c0_4 = arith.constant 0 : index
    %13 = vector.load %arg5[%c0_3, %c0_4] : memref<16x128xf32, #tpu.memory_space<vmem>>, vector<16x128xf32>
    %cst_5 = arith.constant dense<0.000000e+00> : vector<16x128xf32>
    %14 = tpu.matmul %11, %13, %cst_5 {dimension_numbers = #tpu.dot_dimension_numbers<[1], [0], [0], [1], [0, 0, 1, 1], [], []>, precision = #tpu.contract_precision<fp32>} : vector<16x16xf32>, vector<16x128xf32>, vector<16x128xf32> -> vector<16x128xf32>
    %c0_6 = arith.constant 0 : index
    %c0_7 = arith.constant 0 : index
    %15 = vector.load %arg4[%c0_6, %c0_7] : memref<16x128xf32, #tpu.memory_space<vmem>>, vector<16x128xf32>
    %cst_8 = arith.constant dense<0.000000e+00> : vector<16x128xf32>
    %16 = tpu.matmul %6, %15, %cst_8 {dimension_numbers = #tpu.dot_dimension_numbers<[1], [0], [0], [1], [0, 0, 1, 1], [], []>, precision = #tpu.contract_precision<fp32>} : vector<16x16xf32>, vector<16x128xf32>, vector<16x128xf32> -> vector<16x128xf32>
    %17 = arith.subf %14, %16 : vector<16x128xf32>
    %18 = arith.mulf %17, %17 : vector<16x128xf32>
    %cst_9 = arith.constant dense<0.000000e+00> : vector<16xf32>
    %19 = vector.multi_reduction <add>, %18, %cst_9 [1] : vector<16x128xf32> to vector<16xf32>
    %20 = vector.shape_cast %19 : vector<16xf32> to vector<16x1xf32>
    %21 = arith.addf %12, %20 : vector<16x1xf32>
    %22 = math.sqrt %21 : vector<16x1xf32>
    %c0_i32 = arith.constant 0 : i32
    %23 = arith.cmpi eq, %arg0, %c0_i32 : i32
    %c10_i32 = arith.constant 10 : i32
    %c6_i32 = arith.constant 6 : i32
    %24 = arith.select %23, %c10_i32, %c6_i32 : i32
    %25 = tpu.iota {dimensions = array<i32: 0>} : vector<16x1xi32>
    %c16_i32 = arith.constant 16 : i32
    %26 = arith.muli %arg1, %c16_i32 : i32
    %27 = vector.broadcast %26 : i32 to vector<16x1xi32>
    %28 = arith.addi %25, %27 : vector<16x1xi32>
    %29 = vector.broadcast %24 : i32 to vector<16x1xi32>
    %30 = arith.cmpi slt, %28, %29 : vector<16x1xi32>
    %cst_10 = arith.constant 0.000000e+00 : f32
    %31 = vector.broadcast %cst_10 : f32 to vector<16x1xf32>
    %32 = arith.select %30, %22, %31 : vector<16x1xi1>, vector<16x1xf32>
    %33 = vector.shape_cast %32 : vector<16x1xf32> to vector<1x16x1xf32>
    %cst_11 = arith.constant dense<0.000000e+00> : vector<1xf32>
    %34 = vector.multi_reduction <add>, %33, %cst_11 [1, 2] : vector<1x16x1xf32> to vector<1xf32>
    %35 = vector.shape_cast %34 : vector<1xf32> to vector<1x1x1xf32>
    %36 = vector.extract %35[0, 0, 0] : f32 from vector<1x1x1xf32>
    %c1_i32 = arith.constant 1 : i32
    %37 = arith.muli %arg0, %c1_i32 : i32
    %38 = arith.addi %37, %arg1 : i32
    %39 = arith.index_cast %38 : i32 to index
    %40 = memref.load %arg6[%39] : memref<2xf32, #tpu.memory_space<smem>>
    memref.store %36, %arg6[%39] : memref<2xf32, #tpu.memory_space<smem>>
    return
  }
  func.func @transform_0(%arg0: i32, %arg1: i32) -> (i32, i32) {
    %c1_i32 = arith.constant 1 : i32
    %0 = arith.muli %arg0, %c1_i32 : i32
    %1 = arith.addi %0, %arg1 : i32
    %c0_i32 = arith.constant 0 : i32
    %c0_i32_0 = arith.constant 0 : i32
    return %1, %c0_i32 : i32, i32
  }
  func.func @transform_1(%arg0: i32, %arg1: i32) -> (i32, i32) {
    %c1_i32 = arith.constant 1 : i32
    %0 = arith.muli %arg0, %c1_i32 : i32
    %1 = arith.addi %0, %arg1 : i32
    %c0_i32 = arith.constant 0 : i32
    %c0_i32_0 = arith.constant 0 : i32
    return %1, %c0_i32 : i32, i32
  }
  func.func @transform_2(%arg0: i32, %arg1: i32) -> (i32, i32) {
    %c0_i32 = arith.constant 0 : i32
    %c0_i32_0 = arith.constant 0 : i32
    %c0_i32_1 = arith.constant 0 : i32
    return %c0_i32, %c0_i32_0 : i32, i32
  }
  func.func @transform_3(%arg0: i32, %arg1: i32) -> (i32, i32) {
    %c0_i32 = arith.constant 0 : i32
    %c0_i32_0 = arith.constant 0 : i32
    %c0_i32_1 = arith.constant 0 : i32
    return %c0_i32, %c0_i32_0 : i32, i32
  }
  func.func @transform_4(%arg0: i32, %arg1: i32) -> i32 {
    %c0_i32 = arith.constant 0 : i32
    %c0_i32_0 = arith.constant 0 : i32
    return %c0_i32 : i32
  }
}

</mosaic_0001>

<bundles_post_ra>
// kernel: tpu_custom_call.1
= control target key start
LH: loop header
LB: loop body
LE: loop exit
PB: predicated region body
PF: predicated region fallthrough
CT: control target
= control target key end

     0   :  { %9 = vsyncpa [#allocation3], 0  ;;  %s1744_s15 = smov 0   ;;  %s1746_s16 = smov 0   ;;  %s1881_s0 = inlined_call_operand.vmem [shape: s32[32,1], index: 0, kind: input, shape index: {}]   ;;  %s1882_s1 = inlined_call_operand.vmem [shape: s32[32,1], index: 1, kind: input, shape index: {}]   ;;  %s1883_s2 = inlined_call_operand.vmem [shape: f32[16,128], index: 2, kind: input, shape index: {}]   ;;  %s1884_s3 = inlined_call_operand.vmem [shape: f32[16,128], index: 3, kind: input, shape index: {}]   ;;  %s1885_s4 = inlined_call_operand.hbm [shape: f32[2], index: 4, kind: output, shape index: {}]  }
   0x1   :  { %s1748_s17 = smov 0  }
   0x2 LB: > { %s1407_s18 = sadd.s32 4294967295, %s1714_s17   ;;  %s27_s19 = sadd.s32 1, %s1710_s16  ;;  %s1714_s17 = sphi %s1748_s17, %s15_s17   ;;  %s1710_s16 = sphi %s1746_s16, %s1892_s16   ;;  %s1706_s15 = sphi %s1744_s15, %s1891_s15  }
   0x3   : > { %p29_p0 = scmp.ge.s32.totalorder %s27_s19, 2  ;;  %p1410_p1 = scmp.ge.s32.totalorder %s1714_s17, 1 }
   0x4   : > { %p190_p2 = scmp.lt.s32.totalorder %s1714_s17, 3 }
   0x5   : > { %s1894_s19 = smov (%p29_p0, %s27_s19), 0 }
   0x6   : > { %p191_p3 = pnand %p1410_p1, %p190_p2 }
   0x7   : > { %s1411_s20 = sshll.u32 (!%p191_p3), %s1706_s15, 1  ;;  %v1716_v0 = vmov (!%p191_p3), 0   ;;  %v775_v5 = vld [vmem:[%s1883_s2] sm:$0xff] (!%p191_p3)  ;;  %v776_v6 = vld [vmem:[%s1883_s2 + $0x8] sm:$0xff] (!%p191_p3)  ;;  %v238_v37 = vlaneseq (!%p191_p3)  ;;  %vm266_vm0 = vcmask (!%p191_p3), 130048   ;;  %v1717_v41 = vmov (!%p191_p3), 0.0  }
   0x8   : > { %194 = sbr.rel (%p191_p3) target bundleno = 792 (0x318), region = 36  ;;  %1671 = vset.pattern.permute.xlu1 (!%p191_p3), %v1716_v0  ;;  %1670 = vset.pattern.permute.xlu0 (!%p191_p3), %v1716_v0  ;;  %p220_p4 = scmp.lt.s32.totalorder (!%p191_p3), %s1411_s20, 3  ;;  %v784_v7 = vand.u32 (!%p191_p3), 4294901760, %v775_v5  ;;  %v787_v8 = vand.u32 (!%p191_p3), 4294901760, %v776_v6  ;;  %v264_v12 = vld [vmem:[%s1884_s3] sm:$0xff] (!%p191_p3)  ;;  %v265_v13 = vld [vmem:[%s1884_s3 + $0x8] sm:$0xff] (!%p191_p3) }
   0x9   : > { %v274_v14 = vand.u32 (!%p191_p3), 4294901760, %v264_v12  ;;  %v277_v15 = vand.u32 (!%p191_p3), 4294901760, %v265_v13  ;;  %v239_v38 = vand.u32 (!%p191_p3), 127, %v238_v37  ;;  %p1309_p5 = scmp.eq.s32.totalorder (!%p191_p3), %s1706_s15, 0  ;;  %vm1323_vm8 = vcmask (!%p191_p3), 7168   ;;  %p1847_p6 = scmp.eq.s32.totalorder (!%p191_p3), %s1407_s18, 1 }
   0xa   : > { %v1778_v9 = vpack.c.bf16 (!%p191_p3), %v787_v8, %v784_v7  ;;  %v872_v10 = vsub.f32 (!%p191_p3), %v775_v5, %v784_v7  ;;  %v879_v11 = vsub.f32 (!%p191_p3), %v776_v6, %v787_v8  ;;  %s1337_s13 = scalar_lea.smem (!%p191_p3), [#allocation2], %s1706_s15 }
   0xb   : > { %v1788_v18 = vpack.c.bf16 (!%p191_p3), %v277_v15, %v274_v14  ;;  %v362_v19 = vsub.f32 (!%p191_p3), %v264_v12, %v274_v14  ;;  %v369_v20 = vsub.f32 (!%p191_p3), %v265_v13, %v277_v15  ;;  %v1312_v14 = vshrl.u32 (!%p191_p3), %v238_v37, 7 }
   0xc   : > { %1592 = vmatprep.subr.bf16.mxu1 (!%p191_p3), %v1778_v9  ;;  %v873_v16 = vand.u32 (!%p191_p3), 4294901760, %v872_v10  ;;  %v880_v17 = vand.u32 (!%p191_p3), 4294901760, %v879_v11  ;;  %v1599_v34 = vpack.c.bf16 (!%p191_p3), %v879_v11, %v872_v10 }
   0xd   : > { %1594 = vmatpush3.bf16.msra.mxu1 (!%p191_p3), %v1778_v9  ;;  %1568 = vmatprep.subr.bf16.mxu0 (!%p191_p3), %v1788_v18  ;;  %v363_v23 = vand.u32 (!%p191_p3), 4294901760, %v362_v19  ;;  %v370_v24 = vand.u32 (!%p191_p3), 4294901760, %v369_v20  ;;  %v1575_v33 = vpack.c.bf16 (!%p191_p3), %v369_v20, %v362_v19  ;;  %v1313_v15 = vadd.s32 (!%p191_p3), 8, %v1312_v14 }
   0xe   : > { %v874_v21 = vsub.f32 (!%p191_p3), %v872_v10, %v873_v16  ;;  %v881_v22 = vsub.f32 (!%p191_p3), %v879_v11, %v880_v17  ;;  %1570 = vmatpush3.bf16.msra.mxu0 (!%p191_p3), %v1788_v18  ;;  %v1794_v36 = vpack.c.bf16 (!%p191_p3), %v880_v17, %v873_v16 }
   0xf   : > { %s1896_s20 = smov (!%p220_p4, %s1411_s20), 3  ;;  %v364_v27 = vsub.f32 %v362_v19, %v363_v23  ;;  %v371_v28 = vsub.f32 %v369_v20, %v370_v24  ;;  %v1792_v35 = vpack.c.bf16 %v370_v24, %v363_v23 }
  0x10   : > { %s1412_s21 = sshll.u32 %s1896_s20, 3  ;;  %v875_v25 = vand.u32 4294901760, %v874_v21  ;;  %v882_v26 = vand.u32 4294901760, %v881_v22 }
  0x11   : > { %s223_s24 = scalar_lea.vmem %s1881_s0, %s1412_s21  ;;  %s231_s27 = scalar_lea.vmem %s1882_s1, %s1412_s21  ;;  %v365_v30 = vand.u32 4294901760, %v364_v27  ;;  %v372_v31 = vand.u32 4294901760, %v371_v28 }
  0x12   : > { %v235_v1 = vld [vmem:[%s223_s24 + $0x8] sm:$0xff]  ;;  %v234_v2 = vld [vmem:[%s223_s24] sm:$0xff]  ;;  %v1595_v29 = vpack.c.bf16 %v882_v26, %v875_v25  ;;  %s1310_s10 = scalar_select %p1309_p5, 10, 6 }
  0x13   : > { %244 = vperm.xlu1 %1671, %v235_v1   ;;  %241 = vperm.xlu0 %1670, %v234_v2   ;;  %v237_v3 = vld [vmem:[%s231_s27 + $0x8] sm:$0xff]  ;;  %v236_v4 = vld [vmem:[%s231_s27] sm:$0xff]  ;;  %v1571_v32 = vpack.c.bf16 %v372_v31, %v365_v30  ;;  %s1676_s21 = scalar_lea.hbm %s1885_s4, 16 }
  0x14   : > { %1596 = vmatprep.subr.bf16.mxu1 %v1595_v29  ;;  %v1318_v16 = vstv %s1310_s10  ;;  %p1677_p7 = scmp.ne.s32.totalorder %s1885_s4, %s1676_s21  ;;  %p1682_p10 = scmp.lt.u32.totalorder %s1676_s21, %s1885_s4 }
  0x15   : > { %1572 = vmatprep.subr.bf16.mxu0 %v1571_v32  ;;  %vm1833_vm5 = vcmp.lt.s32.totalorder %v1312_v14, %v1318_v16  ;;  %vm1837_vm6 = vcmp.lt.s32.totalorder %v1313_v15, %v1318_v16 }
  0x16   : > { %p1678_p8 = pnand %p1677_p7, %p1847_p6 }
  0x17   : > { %256 = vperm.xlu1 %1671, %v237_v3   ;;  %253 = vperm.xlu0 %1670, %v236_v4  }
  0x18   : > { %p1679_p9 = pneg %p1678_p8 }
  0x1a   : > { %p1684_p11 = pnand %p1682_p10, %p1679_p9 }
  0x92   : > { %v245_v39 = vpop.permute.xlu1 %244  ;;  %v242_v40 = vpop.permute.xlu0 %241 }
  0x93   : > { %vm247_vm1 = vcmp.eq.s32.totalorder %v239_v38, %v245_v39  ;;  %vm246_vm2 = vcmp.eq.s32.totalorder %v239_v38, %v242_v40 }
  0x94   : > { %v1797_v42 = vsel %vm247_vm1, 1.0, %v1717_v41  ;;  %v1415_v43 = vsel %vm246_vm2, 1.0, %v1717_v41 }
  0x95   : > { %v781_v44 = vsel %vm266_vm0, %v1797_v42, 0  ;;  %v778_v45 = vsel %vm266_vm0, %v1415_v43, 0 }
  0x96   : > { %v861_v46 = vsub.f32 %v781_v44, %v781_v44  ;;  %v257_v47 = vpop.permute.xlu1 %256  ;;  %v254_v48 = vpop.permute.xlu0 %253  ;;  %v851_v49 = vsub.f32 %v778_v45, %v778_v45 }
  0x97   : > { %vm259_vm3 = vcmp.eq.s32.totalorder %v239_v38, %v257_v47  ;;  %vm258_vm4 = vcmp.eq.s32.totalorder %v239_v38, %v254_v48 }
  0x98   : > { %v1418_v50 = vsel %vm259_vm3, 1.0, %v1717_v41  ;;  %v1417_v51 = vsel %vm258_vm4, 1.0, %v1717_v41  ;;  %v852_v52 = vand.u32 4294901760, %v851_v49  ;;  %v862_v53 = vand.u32 4294901760, %v861_v46 }
  0x99   : > { %v271_v54 = vsel %vm266_vm0, %v1418_v50, 0  ;;  %v268_v55 = vsel %vm266_vm0, %v1417_v51, 0 }
  0x9a   : > { %v351_v56 = vsub.f32 %v271_v54, %v271_v54  ;;  %v853_v57 = vsub.f32 %v851_v49, %v852_v52  ;;  %v863_v58 = vsub.f32 %v861_v46, %v862_v53  ;;  %v341_v59 = vsub.f32 %v268_v55, %v268_v55 }
  0x9c   : > { %v854_v60 = vand.u32 4294901760, %v853_v57  ;;  %v864_v61 = vand.u32 4294901760, %v863_v58  ;;  %v342_v62 = vand.u32 4294901760, %v341_v59  ;;  %v352_v63 = vand.u32 4294901760, %v351_v56 }
  0x9e   : > { %1529 = vmatprep.mubr.f32.mxu1 %v854_v60  ;;  %v343_v0 = vsub.f32 %v341_v59, %v342_v62  ;;  %v353_v1 = vsub.f32 %v351_v56, %v352_v63 }
  0x9f   : > { %1530 = vmatmul.mubr.f32.vlgmr.msra.gmra.mrb[0].mxu1 %v864_v61 }
  0xa0   : > { %1536 = vmatprep.mubr.msk.f32.mxu1 %vm266_vm0, %v1415_v43  ;;  %v344_v2 = vand.u32 4294901760, %v343_v0  ;;  %v354_v3 = vand.u32 4294901760, %v353_v1  ;;  %1598 = vmatpush3.bf16.msra.mxu1 %v1595_v29 }
  0xa1   : > { %1600 = vmatprep.subr.bf16.mxu1 %v1599_v34 }
  0xa2   : > { %1487 = vmatprep.mubr.f32.mxu0 %v344_v2 }
  0xa3   : > { %1488 = vmatmul.mubr.f32.vlgmr.msra.gmra.mrb[0].mxu0 %v354_v3 }
  0xa4   : > { %1574 = vmatpush3.bf16.msra.mxu0 %v1571_v32  ;;  %1494 = vmatprep.mubr.msk.f32.mxu0 %vm266_vm0, %v1417_v51 }
  0xa5   : > { %1576 = vmatprep.subr.bf16.mxu0 %v1575_v33 }
  0xa7   : > { %1537 = vmatmul.mubr.msk.f32.vlgmr.msra.gmra.mrb[0].mxu1 %vm266_vm0, %v1797_v42 }
  0xa8   : > { %1543 = vmatprep.mubr.f32.mxu1 %v851_v49  ;;  %1602 = vmatpush3.bf16.msra.mxu1 %v1599_v34 }
  0xa9   : > { %1604 = vmatprep.subr.bf16.mxu1 %v1778_v9 }
  0xab   : > { %1495 = vmatmul.mubr.msk.f32.vlgmr.msra.gmra.mrb[0].mxu0 %vm266_vm0, %v1418_v50 }
  0xac   : > { %1578 = vmatpush3.bf16.msra.mxu0 %v1575_v33  ;;  %1501 = vmatprep.mubr.f32.mxu0 %v341_v59 }
  0xad   : > { %1580 = vmatprep.subr.bf16.mxu0 %v1788_v18 }
  0xaf   : > { %1544 = vmatmul.mubr.f32.vlgmr.msra.gmra.mrb[0].mxu1 %v861_v46 }
  0xb0   : > { %1550 = vmatprep.mubr.f32.mxu1 %v852_v52  ;;  %1606 = vmatpush3.bf16.msra.mxu1 %v1778_v9 }
  0xb1   : > { %1608 = vmatprep.subr.bf16.mxu1 %v1794_v36 }
  0xb3   : > { %1502 = vmatmul.mubr.f32.vlgmr.msra.gmra.mrb[0].mxu0 %v351_v56 }
  0xb4   : > { %1582 = vmatpush3.bf16.msra.mxu0 %v1788_v18  ;;  %1508 = vmatprep.mubr.f32.mxu0 %v342_v62 }
  0xb5   : > { %1584 = vmatprep.subr.bf16.mxu0 %v1792_v35 }
  0xb7   : > { %1551 = vmatmul.mubr.f32.vlgmr.msra.gmra.mrb[0].mxu1 %v862_v53 }
  0xb8   : > { %1557 = vmatprep.mubr.msk.f32.mxu1 %vm266_vm0, %v1415_v43  ;;  %1610 = vmatpush3.bf16.msra.mxu1 %v1794_v36 }
  0xb9   : > { %1612 = vmatprep.subr.bf16.mxu1 %v1778_v9 }
  0xbb   : > { %1509 = vmatmul.mubr.f32.vlgmr.msra.gmra.mrb[0].mxu0 %v352_v63 }
  0xbc   : > { %1586 = vmatpush3.bf16.msra.mxu0 %v1792_v35  ;;  %1515 = vmatprep.mubr.msk.f32.mxu0 %vm266_vm0, %v1417_v51 }
  0xbd   : > { %1588 = vmatprep.subr.bf16.mxu0 %v1788_v18 }
  0xbf   : > { %1558 = vmatmul.mubr.msk.f32.vlgmr.msra.gmra.mrb[0].mxu1 %vm266_vm0, %v1797_v42 }
  0xc0   : > { %1564 = vmatprep.mubr.msk.f32.mxu1 %vm266_vm0, %v1415_v43  ;;  %1614 = vmatpush3.bf16.msra.mxu1 %v1778_v9 }
  0xc3   : > { %1516 = vmatmul.mubr.msk.f32.vlgmr.msra.gmra.mrb[0].mxu0 %vm266_vm0, %v1418_v50 }
  0xc4   : > { %1590 = vmatpush3.bf16.msra.mxu0 %v1788_v18  ;;  %1522 = vmatprep.mubr.msk.f32.mxu0 %vm266_vm0, %v1417_v51 }
  0xc7   : > { %1565 = vmatmul.mubr.msk.f32.vlgmr.msra.gmra.mrb[0].mxu1 %vm266_vm0, %v1797_v42 }
  0xcb   : > { %1523 = vmatmul.mubr.msk.f32.vlgmr.msra.gmra.mrb[0].mxu0 %vm266_vm0, %v1418_v50 }
 0x19a   : > { %v1566_v4 = vpop.f32.mrb[0].mxu1 }
 0x19b   : > { %v1275_v5 = vpop.f32.mrb[1].mxu1 }
 0x19e   : > { %v1524_v6 = vpop.f32.mrb[0].mxu0 }
 0x19f   : > { %v1286_v7 = vsub.f32 %v1524_v6, %v1566_v4  ;;  %v765_v8 = vpop.f32.mrb[1].mxu0 }
 0x1a0   : > { %v1285_v10 = vsub.f32 %v765_v8, %v1275_v5 }
 0x1a1   : > { %v1288_v11 = vmul.f32 %v1286_v7, %v1286_v7 }
 0x1a2   : > { %v1287_v9 = vmul.f32 %v1285_v10, %v1285_v10 }
 0x1a3   : > { %1291 = vadd.xlane.f32.xlu1 %v1288_v11 }
 0x1a4   : > { %1289 = vadd.xlane.f32.xlu0 %v1287_v9 }
 0x230   : > { %v1292_v12 = vpop.xlane.xlu1 %1291 }
 0x231   : > { %1672 = vrsqrt.f32 %v1292_v12  ;;  %v1290_v13 = vpop.xlane.xlu0 %1289  ;;  %vm1304_vm7 = vcmp.eq.f32.partialorder %v1292_v12, inf  ;;  %v1307_v22 = vand.u32 2147483648, %v1292_v12  ;;  %vm1306_vm10 = vcmp.eq.f32.partialorder %v1292_v12, 0.0 }
 0x232   : > { %1674 = vrsqrt.f32 %v1290_v13  ;;  %vm1297_vm9 = vcmp.eq.f32.partialorder %v1290_v13, inf  ;;  %v1300_v24 = vand.u32 2147483648, %v1290_v13  ;;  %vm1299_vm11 = vcmp.eq.f32.partialorder %v1290_v13, 0.0 }
 0x23b   : > { %v1673_v17 = vpop.eup %1672 }
 0x23c   : > { %v1675_v18 = vpop.eup %1674  ;;  %v1303_v19 = vmul.f32 %v1673_v17, %v1292_v12 }
 0x23d   : > { %v1296_v23 = vmul.f32 %v1675_v18, %v1290_v13 }
 0x23e   : > { %v1305_v25 = vsel %vm1304_vm7, %v1292_v12, %v1303_v19 }
 0x23f   : > { %v1298_v26 = vsel %vm1297_vm9, %v1290_v13, %v1296_v23  ;;  %v1308_v27 = vsel %vm1306_vm10, %v1307_v22, %v1305_v25 }
 0x240   : > { %v1301_v28 = vsel %vm1299_vm11, %v1300_v24, %v1298_v26  ;;  %v1322_v29 = vsel %vm1837_vm6, %v1308_v27, 0.0 }
 0x241   : > { %v1321_v30 = vsel %vm1833_vm5, %v1301_v28, 0.0  ;;  %v1325_v31 = vsel %vm1323_vm8, %v1322_v29, 0.0 }
 0x242   : > { %v1324_v32 = vsel %vm1323_vm8, %v1321_v30, 0.0 }
 0x243   : > { %v1326_v33 = vadd.f32 %v1325_v31, %v1324_v32 }
 0x245   : > { %1327 = vadd.xlane.f32.xlu0 %v1326_v33 }
 0x2d2   : > { %v1328_v34 = vpop.xlane.xlu0 %1327 }
 0x2d3   : > { %v1329_v35 = vrot.slane %v1328_v34, 4 }
 0x2d5   : > { %v1330_v36 = vadd.f32 %v1329_v35, %v1328_v34 }
 0x2d7   : > { %v1331_v37 = vrot.slane %v1330_v36, 2 }
 0x2d9   : > { %v1332_v38 = vadd.f32 %v1331_v37, %v1330_v36 }
 0x2db   : > { %v1333_v39 = vrot.slane %v1332_v38, 1 }
 0x2dd   : > { %v1334_v40 = vadd.f32 %v1333_v39, %v1332_v38 }
 0x2df   : > { %1635 = vpush %v1334_v40 }
 0x310   : > { %s1636_s12 = spop %1635 }
 0x311   : > { %1338 = sst [smem:[%s1337_s13]] %s1636_s12 }
 0x312   : > { %1687 = shalt.err (!%p1684_p11)
}
 0x313   : > { %s1718_s25 = smov [#allocation2]  }
 0x314   : > { %1638 = dma.smem_to_hbm (%p1847_p6), %s1718_s25, 16, %s1885_s4, [#allocation3]  }
 0x315   : > { %1701 = dma.done.wait (%p1847_p6), [#allocation3], 16  }
 0x316   : > { %1703 = vsyncadd (%p1847_p6), [#allocation3], 4294967280 }
 0x317   : > { %1352 = sfence }
 0x318 PF: > { %s15_s17 = sadd.s32 1, %s1714_s17   ;;  %s1891_s15 = smov %s1710_s16 }
 0x319   : > { %p12_p12 = scmp.ge.s32.totalorder %s15_s17, 4   ;;  %s1892_s16 = smov %s1894_s19 }
 0x31b   :  { %14 = sbr.rel (!%p12_p12) target bundleno = 2 (0x2), region = 67 }
 0x322   :  { %1358 = vsyncpa [#allocation3], 1 }
 0x323   :  { %1360 = vsyncpa [#allocation3 + $0x1], 1 }

</bundles_post_ra>
